<compile_context>
chip_gen: v7x
topology: tpu7x:2x2x1
jax: 0.10.0
libtpu: 0.0.40
codegen_flags: <defaults>
</compile_context>

<pallas_src>
import functools

import jax
import jax.numpy as jnp
from jax.experimental import pallas as pl
from jax.experimental.pallas import tpu as pltpu


def _final_layer_kernel(x_ref, mod_ref, w_ref, b_ref, o_ref):
    # x_ref:   (1, TL, D)   tile of TL tokens of the current batch element
    # mod_ref: (1, 2, D)    f32; row 0 = shift, row 1 = (1 + scale)
    # w_ref:   (C, D)       linear weight (torch layout), native dtype
    # b_ref:   (C, 1)       f32 bias column
    # o_ref:   (1, C, TL)   transposed output tile (TL % 128 == 0 or TL == L)
    x = x_ref[0].astype(jnp.float32)                     # (TL, D)

    # LayerNorm over hidden dim, eps=1e-6, no elementwise affine (f32 stats).
    mu = jnp.mean(x, axis=-1, keepdims=True)
    xc = x - mu
    var = jnp.mean(xc * xc, axis=-1, keepdims=True)
    xn = xc * jax.lax.rsqrt(var + 1e-6)                  # (TL, D)

    # t2i_modulate: x * (1 + scale) + shift   ((1 + scale) precomputed).
    m = mod_ref[0]                                       # (2, D) f32
    shift = m[0:1, :]
    scale1 = m[1:2, :]
    y = (xn * scale1 + shift).astype(w_ref.dtype)        # (TL, D) in MXU dtype

    # Linear on the MXU, computed transposed:
    #   out_T[c, t] = sum_d w[c, d] * y[t, d]
    # Contraction over the minor dim of both operands (same pattern as q.k^T
    # in flash attention) -> output (C, TL) with a lane-dense last dim.
    out_t = jax.lax.dot_general(
        w_ref[...], y,
        dimension_numbers=(((1,), (1,)), ((), ())),
        preferred_element_type=jnp.float32,
    )                                                    # (C, TL) f32
    o_ref[0] = (out_t + b_ref[...]).astype(o_ref.dtype)


def _pick_tile_l(length):
    # Prefer ~512-token tiles that are a multiple of 128: lane-dense output
    # block, aligned to (8, 128) tiling, amortizes the ~0.35 us per-step
    # overhead, and keeps the double-buffered x tile small enough for v7x.
    for cand in (512, 384, 256, 128):
        if length % cand == 0:
            return cand
    return length  # block == full array dim is always a legal BlockSpec


@functools.partial(jax.jit, static_argnames=("tile_l",))
def final_layer_forward(x, cond_BD, t, scale_shift_table, w, b, *, tile_l=None):
    """x: (B, L, D); cond_BD, t: (B, D) (t may be None);
    scale_shift_table: (2, D); w: (C, D) torch nn.Linear layout; b: (C,)."""
    B, L, D = x.shape
    C = w.shape[0]
    if tile_l is None:
        tile_l = _pick_tile_l(L)
    assert L % tile_l == 0
    n_l = L // tile_l

    # Per-batch shift / (1 + scale) table in f32 (matches torch broadcasting
    # + chunk(2, dim=1)).  Folding "+1" here removes a per-step VPU add.
    mod = scale_shift_table[None].astype(jnp.float32)        # (1, 2, D)
    if t is not None:
        mod = mod + t[:, None].astype(jnp.float32)
    mod = mod + cond_BD[:, None].astype(jnp.float32)         # (B, 2, D)
    mod = mod.at[:, 1, :].add(1.0)

    b_col = b.reshape(C, 1).astype(jnp.float32)

    itemsize = jnp.dtype(x.dtype).itemsize
    cost = pl.CostEstimate(
        flops=2 * B * L * D * C,
        transcendentals=B * L,                                 # rsqrt / token
        bytes_accessed=(B * L * D * itemsize                   # read x
                        + B * L * C * itemsize                 # write out
                        + C * D * jnp.dtype(w.dtype).itemsize  # weight
                        + B * 2 * D * 4 + C * 4),              # mod + bias
    )

    grid = (B, n_l)
    # NOTE: the w / b blocks have constant index_maps, so Pallas never
    # re-DMAs them across grid steps; they are tiny (C*D elements), so we
    # deliberately skip pl.Buffered(1) rather than risk an unsupported
    # pipeline_mode for a negligible VMEM saving.
    out_t = pl.pallas_call(
        _final_layer_kernel,
        out_shape=jax.ShapeDtypeStruct((B, C, L), x.dtype),
        grid_spec=pltpu.PrefetchScalarGridSpec(
            num_scalar_prefetch=0,
            grid=grid,
            in_specs=[
                pl.BlockSpec((1, tile_l, D), lambda bi, li: (bi, li, 0)),
                pl.BlockSpec((1, 2, D), lambda bi, li: (bi, 0, 0)),
                pl.BlockSpec((C, D), lambda bi, li: (0, 0)),
                pl.BlockSpec((C, 1), lambda bi, li: (0, 0)),
            ],
            out_specs=pl.BlockSpec((1, C, tile_l), lambda bi, li: (bi, 0, li)),
        ),
        compiler_params=pltpu.CompilerParams(
            dimension_semantics=("parallel", "parallel"),
            vmem_limit_bytes=32 * 1024 * 1024,
        ),
        cost_estimate=cost,
    )(x, mod, w, b_col)

    # Layout plumbing only: (B, C, L) -> (B, L, C).
    return jnp.transpose(out_t, (0, 2, 1))


def _reference(x, cond_BD, t, sst, w, b):
    x = x.astype(jnp.float32)
    mod = sst[None].astype(jnp.float32)
    if t is not None:
        mod = mod + t[:, None].astype(jnp.float32)
    mod = mod + cond_BD[:, None].astype(jnp.float32)
    shift, scale = mod[:, 0:1, :], mod[:, 1:2, :]
    mu = jnp.mean(x, axis=-1, keepdims=True)
    var = jnp.mean((x - mu) ** 2, axis=-1, keepdims=True)
    xn = (x - mu) / jnp.sqrt(var + 1e-6)
    y = xn * (1.0 + scale) + shift
    return y @ w.astype(jnp.float32).T + b.astype(jnp.float32)


if __name__ == "__main__":
    # Small shapes: batch=2, seq=16, hidden=32, out_channels=8
    B, L, D, C = 2, 16, 32, 8

    key = jax.random.PRNGKey(0)
    kx, kc, kt, ks, kw, kb = jax.random.split(key, 6)

    x = jax.random.normal(kx, (B, L, D), dtype=jnp.float32)
    cond_BD = jax.random.normal(kc, (B, D), dtype=jnp.float32)
    t = jax.random.normal(kt, (B, D), dtype=jnp.float32)

    # Deterministic parameter init (matching __init__ shapes).
    scale_shift_table = jax.random.normal(ks, (2, D), dtype=jnp.float32) / (D ** 0.5)
    # nn.Linear(hidden, out): weight (C, D), bias (C)  (torch layout kept).
    bound = 1.0 / (D ** 0.5)
    w = jax.random.uniform(kw, (C, D), dtype=jnp.float32, minval=-bound, maxval=bound)
    b = jax.random.uniform(kb, (C,), dtype=jnp.float32, minval=-bound, maxval=bound)

    # f32 path with t
    out = jax.block_until_ready(
        final_layer_forward(x, cond_BD, t, scale_shift_table, w, b))
    ref = _reference(x, cond_BD, t, scale_shift_table, w, b)
    assert out.shape == (B, L, C)
    assert jnp.allclose(out, ref, atol=1e-4, rtol=1e-4), "mismatch vs reference"

    # f32 path with t=None (else branch of the torch forward)
    out_no_t = jax.block_until_ready(
        final_layer_forward(x, cond_BD, None, scale_shift_table, w, b))
    ref_no_t = _reference(x, cond_BD, None, scale_shift_table, w, b)
    assert jnp.allclose(out_no_t, ref_no_t, atol=1e-4, rtol=1e-4)

    # bf16 path: LN/modulate stay f32 inside the kernel, matmul runs in bf16.
    xb = x.astype(jnp.bfloat16)
    cb = cond_BD.astype(jnp.bfloat16)
    tb = t.astype(jnp.bfloat16)
    sb = scale_shift_table.astype(jnp.bfloat16)
    wb = w.astype(jnp.bfloat16)
    bb = b.astype(jnp.bfloat16)
    out_bf16 = jax.block_until_ready(final_layer_forward(xb, cb, tb, sb, wb, bb))
    ref_bf16 = _reference(xb, cb, tb, sb, wb, bb)
    assert out_bf16.dtype == jnp.bfloat16
    assert jnp.allclose(out_bf16.astype(jnp.float32), ref_bf16, atol=0.1, rtol=0.1)

    print("KERNEL_OK")
</pallas_src>

<mosaic_0001>
module attributes {stable_mosaic.version = 11 : i64} {
  func.func @_final_layer_kernel(%arg0: i32, %arg1: i32, %arg2: memref<1x16x32xf32, #tpu.memory_space<vmem>>, %arg3: memref<1x2x32xf32, #tpu.memory_space<vmem>>, %arg4: memref<8x32xf32, #tpu.memory_space<vmem>>, %arg5: memref<8x1xf32, #tpu.memory_space<vmem>>, %arg6: memref<1x8x16xf32, #tpu.memory_space<vmem>>) attributes {dimension_semantics = [#tpu.dimension_semantics<parallel>, #tpu.dimension_semantics<parallel>], iteration_bounds = array<i64: 2, 1>, scalar_prefetch = 0 : i64, scratch_operands = 0 : i64, tpu.core_type = #tpu.core_type<tc>, window_params = [{transform_indices = @transform_0, window_bounds = array<i64: 1, 16, 32>}, {transform_indices = @transform_1, window_bounds = array<i64: 1, 2, 32>}, {pipeline_mode = #tpu.pipeline_mode<synchronous>, transform_indices = @transform_2, window_bounds = array<i64: 8, 32>}, {pipeline_mode = #tpu.pipeline_mode<synchronous>, transform_indices = @transform_3, window_bounds = array<i64: 8, 1>}, {transform_indices = @transform_4, window_bounds = array<i64: 1, 8, 16>}]} {
    %c0 = arith.constant 0 : index
    %c0_0 = arith.constant 0 : index
    %c0_1 = arith.constant 0 : index
    %0 = vector.load %arg2[%c0, %c0_0, %c0_1] : memref<1x16x32xf32, #tpu.memory_space<vmem>>, vector<1x16x32xf32>
    %1 = vector.shape_cast %0 : vector<1x16x32xf32> to vector<16x32xf32>
    %cst = arith.constant dense<0.000000e+00> : vector<16xf32>
    %2 = vector.multi_reduction <add>, %1, %cst [1] : vector<16x32xf32> to vector<16xf32>
    %3 = vector.shape_cast %2 : vector<16xf32> to vector<16x1xf32>
    %cst_2 = arith.constant 3.200000e+01 : f32
    %4 = vector.broadcast %cst_2 : f32 to vector<16x1xf32>
    %5 = arith.divf %3, %4 : vector<16x1xf32>
    %6 = vector.broadcast %5 : vector<16x1xf32> to vector<16x32xf32>
    %7 = arith.subf %1, %6 : vector<16x32xf32>
    %8 = arith.mulf %7, %7 : vector<16x32xf32>
    %cst_3 = arith.constant dense<0.000000e+00> : vector<16xf32>
    %9 = vector.multi_reduction <add>, %8, %cst_3 [1] : vector<16x32xf32> to vector<16xf32>
    %10 = vector.shape_cast %9 : vector<16xf32> to vector<16x1xf32>
    %cst_4 = arith.constant 3.200000e+01 : f32
    %11 = vector.broadcast %cst_4 : f32 to vector<16x1xf32>
    %12 = arith.divf %10, %11 : vector<16x1xf32>
    %cst_5 = arith.constant 9.99999997E-7 : f32
    %13 = vector.broadcast %cst_5 : f32 to vector<16x1xf32>
    %14 = arith.addf %12, %13 : vector<16x1xf32>
    %15 = math.rsqrt %14 : vector<16x1xf32>
    %16 = vector.broadcast %15 : vector<16x1xf32> to vector<16x32xf32>
    %17 = arith.mulf %7, %16 : vector<16x32xf32>
    %c0_6 = arith.constant 0 : index
    %c0_7 = arith.constant 0 : index
    %c0_8 = arith.constant 0 : index
    %18 = vector.load %arg3[%c0_6, %c0_7, %c0_8] : memref<1x2x32xf32, #tpu.memory_space<vmem>>, vector<1x2x32xf32>
    %19 = vector.shape_cast %18 : vector<1x2x32xf32> to vector<2x32xf32>
    %20 = vector.extract_strided_slice %19 {offsets = [0, 0], sizes = [1, 32], strides = [1, 1]} : vector<2x32xf32> to vector<1x32xf32>
    %21 = vector.extract_strided_slice %19 {offsets = [1, 0], sizes = [1, 32], strides = [1, 1]} : vector<2x32xf32> to vector<1x32xf32>
    %22 = vector.broadcast %21 : vector<1x32xf32> to vector<16x32xf32>
    %23 = arith.mulf %17, %22 : vector<16x32xf32>
    %24 = vector.broadcast %20 : vector<1x32xf32> to vector<16x32xf32>
    %25 = arith.addf %23, %24 : vector<16x32xf32>
    %c0_9 = arith.constant 0 : index
    %c0_10 = arith.constant 0 : index
    %26 = vector.load %arg4[%c0_9, %c0_10] : memref<8x32xf32, #tpu.memory_space<vmem>>, vector<8x32xf32>
    %cst_11 = arith.constant dense<0.000000e+00> : vector<8x16xf32>
    %27 = tpu.matmul %26, %25, %cst_11 {dimension_numbers = #tpu.dot_dimension_numbers<[1], [1], [0], [0], [0, 0, 1, 0], [], []>} : vector<8x32xf32>, vector<16x32xf32>, vector<8x16xf32> -> vector<8x16xf32>
    %c0_12 = arith.constant 0 : index
    %c0_13 = arith.constant 0 : index
    %28 = vector.load %arg5[%c0_12, %c0_13] : memref<8x1xf32, #tpu.memory_space<vmem>>, vector<8x1xf32>
    %29 = vector.broadcast %28 : vector<8x1xf32> to vector<8x16xf32>
    %30 = arith.addf %27, %29 : vector<8x16xf32>
    %c0_14 = arith.constant 0 : index
    %c0_15 = arith.constant 0 : index
    %c0_16 = arith.constant 0 : index
    %31 = vector.load %arg6[%c0_14, %c0_15, %c0_16] : memref<1x8x16xf32, #tpu.memory_space<vmem>>, vector<1x8x16xf32>
    %32 = vector.shape_cast %31 : vector<1x8x16xf32> to vector<8x16xf32>
    %33 = vector.shape_cast %30 : vector<8x16xf32> to vector<1x8x16xf32>
    tpu.vector_store %arg6[%c0_14, %c0_15, %c0_16], %33 {strides = array<i32>} : memref<1x8x16xf32, #tpu.memory_space<vmem>>, vector<1x8x16xf32>,
    return
  }
  func.func @transform_0(%arg0: i32, %arg1: i32) -> (i32, i32, i32) {
    %c0_i32 = arith.constant 0 : i32
    %c0_i32_0 = arith.constant 0 : i32
    return %arg0, %arg1, %c0_i32 : i32, i32, i32
  }
  func.func @transform_1(%arg0: i32, %arg1: i32) -> (i32, i32, i32) {
    %c0_i32 = arith.constant 0 : i32
    %c0_i32_0 = arith.constant 0 : i32
    %c0_i32_1 = arith.constant 0 : i32
    return %arg0, %c0_i32, %c0_i32_0 : i32, i32, i32
  }
  func.func @transform_2(%arg0: i32, %arg1: i32) -> (i32, i32) {
    %c0_i32 = arith.constant 0 : i32
    %c0_i32_0 = arith.constant 0 : i32
    %c0_i32_1 = arith.constant 0 : i32
    return %c0_i32, %c0_i32_0 : i32, i32
  }
  func.func @transform_3(%arg0: i32, %arg1: i32) -> (i32, i32) {
    %c0_i32 = arith.constant 0 : i32
    %c0_i32_0 = arith.constant 0 : i32
    %c0_i32_1 = arith.constant 0 : i32
    return %c0_i32, %c0_i32_0 : i32, i32
  }
  func.func @transform_4(%arg0: i32, %arg1: i32) -> (i32, i32, i32) {
    %c0_i32 = arith.constant 0 : i32
    %c0_i32_0 = arith.constant 0 : i32
    return %arg0, %c0_i32, %arg1 : i32, i32, i32
  }
}

</mosaic_0001>

<bundles_post_ra>
// kernel: final_layer_forward.1
= control target key start
LH: loop header
LB: loop body
LE: loop exit
PB: predicated region body
PF: predicated region fallthrough
CT: control target
= control target key end

     0   :  { %9 = vsyncpa [#allocation3], 0  ;;  %s812_s0 = inlined_call_operand.vmem [shape: f32[2,16,32], index: 0, kind: input, shape index: {}]   ;;  %s813_s1 = inlined_call_operand.vmem [shape: f32[2,2,32], index: 1, kind: input, shape index: {}]   ;;  %s814_s2 = inlined_call_operand.vmem [shape: f32[8,32], index: 2, kind: input, shape index: {}]   ;;  %s815_s3 = inlined_call_operand.vmem [shape: f32[8,1], index: 3, kind: input, shape index: {}]   ;;  %s816_s4 = inlined_call_operand.hbm [shape: f32[2,8,16], index: 4, kind: output, shape index: {}]  }
   0x1   :  { %11 = vsyncpa [#allocation3 + $0x1], 0  ;;  %s680_s15 = smov 0   ;;  %s682_s16 = smov 0  }
   0x2   :  { %s684_s17 = smov 0   ;;  %s686_s18 = smov 0  }
   0x3   :  { %s688_s19 = smov 0   ;;  %s690_s20 = smov 0  }
   0x4 LB: > { %s475_s21 = sadd.s32 4294967295, %s648_s20   ;;  %s476_s22 = sadd.s32 4294967294, %s648_s20   ;;  %s648_s20 = sphi %s690_s20, %s17_s20   ;;  %s644_s19 = sphi %s688_s19, %s823_s19   ;;  %s640_s18 = sphi %s686_s18, %s822_s18   ;;  %s636_s17 = sphi %s684_s17, %s821_s17   ;;  %s632_s16 = sphi %s682_s16, %s820_s16   ;;  %s628_s15 = sphi %s680_s15, %s819_s15  }
   0x5   : > { %s29_s23 = sadd.s32 1, %s644_s19  ;;  %s134_s24 = sadd.s32 1, %s636_s17 }
   0x6   : > { %p31_p0 = scmp.ge.s32.totalorder %s29_s23, 2  ;;  %p144_p1 = scmp.ne.s32.totalorder %s636_s17, %s632_s16 }
   0x7   : > { %p145_p2 = scmp.eq.s32.totalorder %s475_s21, 1  ;;  %p150_p3 = scmp.ne.s32.totalorder %s632_s16, %s628_s15 }
   0x8   : > { %s825_s23 = smov (%p31_p0, %s29_s23), 0  ;;  %p151_p5 = scmp.eq.s32.totalorder %s476_s22, 1 }
   0x9   : > { %p720_p4 = por %p145_p2, %p144_p1  ;;  %s129_s26 = ssub.s32 %s644_s19, %s825_s23 }
   0xa   : > { %p479_p6 = scmp.ge.s32.totalorder %s648_s20, 1  ;;  %p132_p7 = scmp.eq.s32.totalorder %s129_s26, 0 }
   0xb   : > { %p727_p8 = por %p151_p5, %p150_p3  ;;  %p195_p9 = scmp.lt.s32.totalorder %s648_s20, 3 }
   0xc   : > { %s733_s28 = scalar_select %p132_p7, %s636_s17, %s134_s24  }
   0xd   : > { %p196_p10 = pnand %p479_p6, %p195_p9 }
   0xe   : > { %p230_p11 = scmp.lt.s32.totalorder (!%p196_p10), %s640_s18, 1  ;;  %vm245_vm0 = vcmask (!%p196_p10), 261120   ;;  %v650_v14 = vmov (!%p196_p10), 0.0|0.0   ;;  %vm651_vm1 = vmmov (!%p196_p10), 0   ;;  %v652_v15 = vmov (!%p196_p10), 0.0   ;;  %v287_v16 = vld [vmem:[%s815_s3] sm:$0xff] (!%p196_p10) }
   0xf   : > { %199 = sbr.rel (%p196_p10) target bundleno = 581 (0x245), region = 36  ;;  %502 = vmatprep.subr.bf16.mxu0 (!%p196_p10), %v650_v14  ;;  %499 = vmatprep.mubr.msk.f32.mxu0 (!%p196_p10), %vm651_vm1, %v652_v15  ;;  %v653_v17 = vmov (!%p196_p10), 0   ;;  %v274_v21 = vlaneseq (!%p196_p10)  ;;  %vm504_vm2 = vmpackc.low (!%p196_p10), %vm245_vm0, %vm245_vm0  ;;  %v286_v40 = vld [vmem:[%s814_s2] sm:$0xff] (!%p196_p10)  ;;  %s226_s22 = sand.u32 (!%p196_p10), 1, %s632_s16   ;;  %vm372_vm3 = vcmask (!%p196_p10), 130048  }
  0x10   : > { %565 = vset.pattern.permute.xlu0 (!%p196_p10), %v653_v17  ;;  %s480_s24 = sshll.u32 (!%p196_p10), %s226_s22, 3  ;;  %s488_s26 = sshll.u32 (!%p196_p10), %s640_s18, 7 }
  0x11   : > { %v275_v25 = vshrl.u32 (!%p196_p10), %v274_v21, 7  ;;  %s375_s8 = scalar_lea.sflag (!%p196_p10), [#allocation3], %s226_s22 }
  0x13   : > { %v276_v26 = vsub.s32 (!%p196_p10), 1, %v275_v25  ;;  %v282_v30 = vsub.s32 (!%p196_p10), 0, %v275_v25 }
  0x16   : > { %s737_s29 = scalar_select %p230_p11, %s640_s18, 1 }
  0x17   : > { %s654_s18 = smov [#allocation2]  }
  0x18   : > { %s491_s30 = sshll.u32 %s737_s29, 4  ;;  %s483_s10 = sshll.u32 %s737_s29, 1 }
  0x19   : > { %s237_s7 = scalar_lea.vmem %s812_s0, %s491_s30  ;;  %s242_s13 = scalar_lea.vmem %s813_s1, %s483_s10 }
  0x1a   : > { %v243_v0 = vld [vmem:[%s237_s7] sm:$0xff]  ;;  %v244_v1 = vld [vmem:[%s237_s7 + $0x8] sm:$0xff]  ;;  %s228_s29 = scalar_lea.vmem [#allocation2], %s480_s24  ;;  %s765_s7 = scalar_lea.hbm %s816_s4, %s488_s26 }
  0x1b   : > { %v246_v2 = vsel %vm245_vm0, %v243_v0, 0.0  ;;  %v249_v3 = vsel %vm245_vm0, %v244_v1, 0.0  ;;  %v273_v27 = vld [vmem:[%s242_s13] sm:$0x3]  ;;  %s389_s30 = sshll.u32 %s228_s29, 4  ;;  %s574_s10 = sshll.u32 %s654_s18, 4  ;;  %s767_s30 = int_to_ptr.vmem [resolvable:$true] %s389_s30  ;;  %s575_s10 = int_to_ptr.vmem [resolvable:$false] %s574_s10 }
  0x1c   : > { %247 = vadd.xlane.f32.xlu0 %v246_v2  ;;  %v277_v29 = vrot.slane %v273_v27, %v276_v26  ;;  %v283_v33 = vrot.slane %v273_v27, %v282_v30  ;;  %s570_s9 = scalar_lea.vmem %s767_s30, 128  ;;  %s576_s11 = scalar_lea.vmem %s575_s10, 256 }
  0x1d   : > { %p571_p12 = scmp.ne.s32.totalorder %s767_s30, %s570_s9  ;;  %p577_p1 = scmp.lt.s32.totalorder %s767_s30, %s575_s10 }
  0x1e   : > { %p578_p2 = scmp.lt.s32.totalorder %s576_s11, %s570_s9 }
  0x1f   : > { %p572_p13 = pnand %p571_p12, %p720_p4 }
  0x20   : > { %250 = vadd.xlane.f32.xlu0 %v249_v3  ;;  %p579_p3 = por %p578_p2, %p577_p1 }
  0x21   : > { %p573_p0 = pneg %p572_p13 }
  0x23   : > { %p580_p5 = pnand %p579_p3, %p573_p0 }
  0x36   : > { %290 = vperm.xlu0 %565, %v287_v16  }
  0xa9   : > { %v248_v4 = vpop.xlane.xlu0 %247 }
  0xaa   : > { %v253_v5 = vmul.f32 0.03125, %v248_v4 }
  0xac   : > { %v255_v6 = vsub.f32 %v243_v0, %v253_v5 }
  0xad   : > { %v251_v7 = vpop.xlane.xlu0 %250 }
  0xae   : > { %v254_v8 = vmul.f32 0.03125, %v251_v7  ;;  %v257_v9 = vmul.f32 %v255_v6, %v255_v6 }
  0xb0   : > { %v256_v10 = vsub.f32 %v244_v1, %v254_v8  ;;  %v259_v11 = vsel %vm245_vm0, %v257_v9, 0.0 }
  0xb1   : > { %260 = vadd.xlane.f32.xlu1 %v259_v11 }
  0xb2   : > { %v258_v12 = vmul.f32 %v256_v10, %v256_v10 }
  0xb4   : > { %v262_v13 = vsel %vm245_vm0, %v258_v12, 0.0 }
  0xb5   : > { %263 = vadd.xlane.f32.xlu1 %v262_v13  ;;  %v291_v41 = vpop.permute.xlu0 %290 }
 0x13e   : > { %v261_v18 = vpop.xlane.xlu1 %260 }
 0x13f   : > { %v265_v19 = vmul.f32 0.03125, %v261_v18 }
 0x141   : > { %v267_v20 = vadd.f32 1e-06, %v265_v19 }
 0x142   : > { %v264_v22 = vpop.xlane.xlu1 %263 }
 0x143   : > { %566 = vrsqrt.f32 %v267_v20  ;;  %v266_v23 = vmul.f32 0.03125, %v264_v22 }
 0x145   : > { %v268_v24 = vadd.f32 1e-06, %v266_v23 }
 0x147   : > { %568 = vrsqrt.f32 %v268_v24 }
 0x14d   : > { %v567_v28 = vpop.eup %566 }
 0x14e   : > { %v271_v31 = vmul.f32 %v567_v28, %v255_v6 }
 0x150   : > { %v278_v35 = vmul.f32 %v277_v29, %v271_v31 }
 0x151   : > { %v569_v32 = vpop.eup %568 }
 0x152   : > { %v272_v34 = vmul.f32 %v569_v32, %v256_v10  ;;  %v284_v37 = vadd.f32 %v283_v33, %v278_v35 }
 0x154   : > { %v279_v36 = vmul.f32 %v277_v29, %v272_v34 }
 0x156   : > { %v285_v38 = vadd.f32 %v283_v33, %v279_v36 }
 0x158   : > { %v503_v39 = vpack.c.bf16 %v285_v38, %v284_v37 }
 0x15a   : > { %505 = vmatpush3.bf16.xpose.msk.msra.mxu0 %vm504_vm2, %v503_v39 }
 0x161   : > { %500 = vmatmul.mubr.msk.f32.vlgmr.msra.gmra.mrb[0].mxu0 %vm245_vm0, %v286_v40 }
 0x234   : > { %v368_v42 = vpop.f32.mrb[0].mxu0 }
 0x235   : > { %v369_v43 = vadd.f32 %v368_v42, %v291_v41  ;;  %v501_v44 = vpop.f32.mrb[1].mxu0 }
 0x237   : > { %373 = vst.msk [vmem:[%s228_s29] sm:$0xff] %vm372_vm3, %v369_v43 }
 0x238   : > { %583 = shalt.err (!%p580_p5)
}
 0x239   : > { %s584_s12 = scalar_lea.hbm %s765_s7, 128  ;;  %s588_s21 = scalar_lea.hbm %s816_s4, 256 }
 0x23a   : > { %p585_p6 = scmp.ne.s32.totalorder %s765_s7, %s584_s12  ;;  %p589_p10 = scmp.lt.u32.totalorder %s765_s7, %s816_s4 }
 0x23b   : > { %p590_p11 = scmp.lt.u32.totalorder %s588_s21, %s584_s12  ;;  %p592_p13 = scmp.lt.u32.totalorder %s584_s12, %s765_s7 }
 0x23c   : > { %p586_p7 = pnand %p585_p6, %p720_p4 }
 0x23d   : > { %p591_p12 = por %p590_p11, %p589_p10 }
 0x23e   : > { %p587_p9 = pneg %p586_p7 }
 0x23f   : > { %p593_p0 = por %p592_p13, %p591_p12 }
 0x241   : > { %p594_p1 = pnand %p593_p0, %p587_p9 }
 0x243   : > { %597 = shalt.err (!%p594_p1)
}
 0x244   : > { %506 = dma.vmem_to_hbm [thread:$0]  (%p720_p4), %s767_s30, 128, %s765_s7, %s375_s8  }
 0x245 PF: > { %p512_p2 = scmp.ge.s32.totalorder %s648_s20, 2  ;;  %s401_s26 = sand.u32 1, %s628_s15  }
 0x246   : > { %s402_s29 = scalar_lea.sflag [#allocation3], %s401_s26 }
 0x247   : > { %p509_p3 = pnand %p512_p2, %p727_p8 }
 0x249   : > { %623 = dma.done.wait (!%p509_p3), %s402_s29, 128  }
 0x24a   : > { %625 = vsyncadd (!%p509_p3), %s402_s29, 4294967168  ;;  %s17_s20 = sadd.s32 1, %s648_s20   ;;  %s819_s15 = smov %s632_s16 }
 0x24b   : > { %p14_p5 = scmp.ge.s32.totalorder %s17_s20, 4   ;;  %s820_s16 = smov %s636_s17 }
 0x24c   : > { %s821_s17 = smov %s733_s28  ;;  %s822_s18 = smov %s644_s19 }
 0x24d   : > { %s823_s19 = smov %s825_s23  ;;  %16 = sbr.rel (!%p14_p5) target bundleno = 4 (0x4), region = 74 }
 0x254   :  { %407 = vsyncpa [#allocation3], 1 }
 0x255   :  { %409 = vsyncpa [#allocation3 + $0x1], 1 }

</bundles_post_ra>
